<compile_context>
chip_gen: v6e
topology: v6e:2x2x1
jax: 0.10.0
libtpu: 0.0.40
codegen_flags: <defaults>
</compile_context>

<pallas_src>
import functools

import jax
import jax.numpy as jnp
import numpy as np
from jax import lax
from jax.experimental import pallas as pl
from jax.experimental.pallas import tpu as pltpu

STD = 2.5
NUM_TAPS = 5                       # fixed "range(5)" axis of generate_weights
_INV_S2 = 1.0 / (STD * STD)
_INV_2S2 = 0.5 * _INV_S2
# c_k = exp(-k^2 / (2 std^2)); the common per-row factor exp(-mu^2/(2 std^2)) cancels
# in the min-max normalization, leaving g_k ∝ c_k * t^k with t = exp(mu / std^2).
_C = tuple(float(np.exp(-(kk * kk) * _INV_2S2)) for kk in range(NUM_TAPS))


def _gca_kernel(seg_ref, q_ref, o_ref):
    # seg_ref : VMEM f32[bt, 1, 1]   -- num_chunks per batch element (as float)
    # q_ref   : VMEM f32[bt, 5,  D]
    # o_ref   : VMEM f32[bt, MC, D]
    bt, mc, _ = o_ref.shape

    nf = seg_ref[...]                                            # (bt, 1, 1)
    q = q_ref[...]                                               # (bt, K, D)

    i3 = lax.broadcasted_iota(jnp.int32, (bt, mc, 1), 1).astype(jnp.float32)

    # mu = i * 4 / (n - 1), guarded for n <= 1 and clamped so masked rows (i >= n)
    # stay inside the tap range [0, 4] (no overflow / 0*inf downstream).
    denom = jnp.maximum(nf - 1.0, 1.0)                           # (bt, 1, 1)
    scale = 4.0 / denom                                          # per-batch divide only
    mu = jnp.clip(i3 * scale, 0.0, 4.0)                          # (bt, mc, 1)

    # Single transcendental per row.
    t1 = jnp.exp(mu * _INV_S2)                                   # in [1, ~1.9]
    t2 = t1 * t1
    g1 = _C[1] * t1
    g2 = _C[2] * t2
    g3 = _C[3] * (t2 * t1)
    g4 = _C[4] * (t2 * t2)                                       # g0 == 1.0 exactly

    # Closed row min/max via elementwise VPU min/max (no XLU, no extra exps).
    gmax = jnp.maximum(jnp.maximum(jnp.maximum(g1, g2), jnp.maximum(g3, g4)), 1.0)
    gmin = jnp.minimum(jnp.minimum(jnp.minimum(g1, g2), jnp.minimum(g3, g4)), 1.0)
    inv_den = 1.0 / (gmax - gmin)                                # >= ~0.25, never ~0

    valid = i3 < nf                                              # (bt, mc, 1)
    is_one = nf == 1.0                                           # (bt, 1, 1)

    # Fold both special cases into w_k = g_k * a + b:
    #   normal valid row : a = 1/(gmax-gmin), b = -gmin*a  -> (g_k - gmin)/(gmax - gmin)
    #   n == 1, row 0    : a = 0,             b = 1        -> 1
    #   i >= n           : a = 0,             b = 0        -> 0
    a = jnp.where(valid & jnp.logical_not(is_one), inv_den, 0.0)
    b = jnp.where(valid & is_one, 1.0, 0.0) - gmin * a

    taps = (None, g1, g2, g3, g4)
    # out[b, i, :] = sum_k w[b, i, k] * q[b, k, :] -- 5-term broadcast FMA on the VPU
    # (K=5 would waste >97% of MXU contraction depth; kernel is HBM-write bound).
    acc = (a + b) * q[:, 0:1, :]                                 # tap 0: g_0 == 1
    for kk in range(1, NUM_TAPS):
        acc = acc + (taps[kk] * a + b) * q[:, kk:kk + 1, :]      # (bt,mc,1)*(bt,1,D)
    o_ref[...] = acc


def _round_up(x, m):
    return ((x + m - 1) // m) * m


@functools.partial(jax.jit, static_argnames=("max_chunk", "block_b"))
def gaussian_cross_attn(segment_len, Q_emb, *, max_chunk, block_b=256):
    """Batched weights(segment_len) @ Q_emb.  Returns f32[B, max_chunk, D]."""
    B, K, D = Q_emb.shape
    assert K == NUM_TAPS

    # Batch tile: large enough to amortize per-step overhead and issue big lane-dense
    # DMAs; small enough that double-buffered in/out blocks plus the in-kernel
    # accumulator stay well inside scoped VMEM on v5e (16 MiB default) .. v7x.
    mc_pad = _round_up(max_chunk, 8)
    d_pad = _round_up(D, 128)
    bytes_per_b = 4 * (4 * mc_pad * d_pad + 2 * 8 * d_pad + 2 * 8 * 128)
    bt = min(block_b, max(1, (12 * 1024 * 1024) // bytes_per_b), B)
    if bt >= 8:
        bt = (bt // 8) * 8                      # keep the batch tile sublane-aligned
    Bp = _round_up(B, bt)

    seg = segment_len.astype(jnp.float32).reshape(B, 1, 1)
    q = Q_emb.astype(jnp.float32)
    if Bp != B:
        seg = jnp.pad(seg, ((0, Bp - B), (0, 0), (0, 0)), constant_values=1.0)
        q = jnp.pad(q, ((0, Bp - B), (0, 0), (0, 0)))

    out = pl.pallas_call(
        _gca_kernel,
        out_shape=jax.ShapeDtypeStruct((Bp, max_chunk, D), jnp.float32),
        grid=(Bp // bt,),
        in_specs=[
            pl.BlockSpec((bt, 1, 1), lambda b: (b, 0, 0)),       # segment_len
            pl.BlockSpec((bt, K, D), lambda b: (b, 0, 0)),       # Q_emb
        ],
        # D should be a multiple of 128 in production for unmasked lane-dense stores.
        out_specs=pl.BlockSpec((bt, max_chunk, D), lambda b: (b, 0, 0)),
        compiler_params=pltpu.CompilerParams(
            dimension_semantics=("parallel",),   # batch-tile axis -> megacore sharding
        ),
    )(seg, q)
    return out[:B]


def _reference(segment_len, Q_emb, max_chunk):
    """Pure numpy reference mirroring the PyTorch module."""
    seg = np.asarray(segment_len)
    q = np.asarray(Q_emb, dtype=np.float64)
    B, K, D = q.shape
    out = np.zeros((B, max_chunk, D), dtype=np.float64)
    xs = np.arange(K, dtype=np.float64)
    for b in range(B):
        n = int(seg[b])
        frame = np.zeros((max_chunk, K), dtype=np.float64)
        if n == 1:
            frame[:1] = 1.0
        else:
            for i in range(n):
                mu = i * 4.0 / (n - 1)
                # pdf constant cancels under min-max normalization
                l = np.exp(-((xs - mu) ** 2) / (2.0 * STD * STD))
                frame[i] = (l - l.min()) / (l.max() - l.min())
        out[b] = frame @ q[b]
    return out.astype(np.float32)


if __name__ == "__main__":
    key = jax.random.PRNGKey(0)
    B, max_chunk, D = 4, 16, 128
    segment_len = jnp.array([3, 1, 7, 16], dtype=jnp.int32)   # chunks per batch element
    Q_emb = jax.random.normal(key, (B, NUM_TAPS, D), dtype=jnp.float32)

    out = gaussian_cross_attn(segment_len, Q_emb, max_chunk=max_chunk)
    out = jax.block_until_ready(out)

    ref = _reference(segment_len, Q_emb, max_chunk)
    np.testing.assert_allclose(np.asarray(out), ref, rtol=1e-4, atol=1e-4)

    print("KERNEL_OK")
</pallas_src>

<mosaic_0001>
module attributes {stable_mosaic.version = 11 : i64} {
  func.func @_gca_kernel(%arg0: i32, %arg1: memref<4x1x1xf32, #tpu.memory_space<vmem>>, %arg2: memref<4x5x128xf32, #tpu.memory_space<vmem>>, %arg3: memref<4x16x128xf32, #tpu.memory_space<vmem>>) attributes {dimension_semantics = [#tpu.dimension_semantics<parallel>], iteration_bounds = array<i64: 1>, scalar_prefetch = 0 : i64, scratch_operands = 0 : i64, tpu.core_type = #tpu.core_type<tc>, window_params = [{transform_indices = @transform_0, window_bounds = array<i64: 4, 1, 1>}, {transform_indices = @transform_1, window_bounds = array<i64: 4, 5, 128>}, {transform_indices = @transform_2, window_bounds = array<i64: 4, 16, 128>}]} {
    %c0 = arith.constant 0 : index
    %c0_0 = arith.constant 0 : index
    %c0_1 = arith.constant 0 : index
    %0 = vector.load %arg1[%c0, %c0_0, %c0_1] : memref<4x1x1xf32, #tpu.memory_space<vmem>>, vector<4x1x1xf32>
    %c0_2 = arith.constant 0 : index
    %c0_3 = arith.constant 0 : index
    %c0_4 = arith.constant 0 : index
    %1 = vector.load %arg2[%c0_2, %c0_3, %c0_4] : memref<4x5x128xf32, #tpu.memory_space<vmem>>, vector<4x5x128xf32>
    %2 = tpu.iota {dimensions = array<i32: 1>} : vector<4x16x1xi32>
    %3 = arith.sitofp %2 : vector<4x16x1xi32> to vector<4x16x1xf32>
    %cst = arith.constant 1.000000e+00 : f32
    %4 = vector.broadcast %cst : f32 to vector<4x1x1xf32>
    %5 = arith.subf %0, %4 : vector<4x1x1xf32>
    %cst_5 = arith.constant 1.000000e+00 : f32
    %6 = vector.broadcast %cst_5 : f32 to vector<4x1x1xf32>
    %7 = arith.maximumf %5, %6 : vector<4x1x1xf32>
    %cst_6 = arith.constant 4.000000e+00 : f32
    %8 = vector.broadcast %cst_6 : f32 to vector<4x1x1xf32>
    %9 = arith.divf %8, %7 : vector<4x1x1xf32>
    %10 = vector.broadcast %9 : vector<4x1x1xf32> to vector<4x16x1xf32>
    %11 = arith.mulf %3, %10 : vector<4x16x1xf32>
    %cst_7 = arith.constant 0.000000e+00 : f32
    %cst_8 = arith.constant 4.000000e+00 : f32
    %12 = vector.broadcast %cst_7 : f32 to vector<4x16x1xf32>
    %13 = arith.maximumf %12, %11 : vector<4x16x1xf32>
    %14 = vector.broadcast %cst_8 : f32 to vector<4x16x1xf32>
    %15 = arith.minimumf %14, %13 : vector<4x16x1xf32>
    %cst_9 = arith.constant 1.600000e-01 : f32
    %16 = vector.broadcast %cst_9 : f32 to vector<4x16x1xf32>
    %17 = arith.mulf %15, %16 : vector<4x16x1xf32>
    %18 = math.exp %17 : vector<4x16x1xf32>
    %19 = arith.mulf %18, %18 : vector<4x16x1xf32>
    %cst_10 = arith.constant 0.923116326 : f32
    %20 = vector.broadcast %cst_10 : f32 to vector<4x16x1xf32>
    %21 = arith.mulf %20, %18 : vector<4x16x1xf32>
    %cst_11 = arith.constant 7.261490e-01 : f32
    %22 = vector.broadcast %cst_11 : f32 to vector<4x16x1xf32>
    %23 = arith.mulf %22, %19 : vector<4x16x1xf32>
    %24 = arith.mulf %19, %18 : vector<4x16x1xf32>
    %cst_12 = arith.constant 0.486752242 : f32
    %25 = vector.broadcast %cst_12 : f32 to vector<4x16x1xf32>
    %26 = arith.mulf %25, %24 : vector<4x16x1xf32>
    %27 = arith.mulf %19, %19 : vector<4x16x1xf32>
    %cst_13 = arith.constant 0.27803731 : f32
    %28 = vector.broadcast %cst_13 : f32 to vector<4x16x1xf32>
    %29 = arith.mulf %28, %27 : vector<4x16x1xf32>
    %30 = arith.maximumf %21, %23 : vector<4x16x1xf32>
    %31 = arith.maximumf %26, %29 : vector<4x16x1xf32>
    %32 = arith.maximumf %30, %31 : vector<4x16x1xf32>
    %cst_14 = arith.constant 1.000000e+00 : f32
    %33 = vector.broadcast %cst_14 : f32 to vector<4x16x1xf32>
    %34 = arith.maximumf %32, %33 : vector<4x16x1xf32>
    %35 = arith.minimumf %21, %23 : vector<4x16x1xf32>
    %36 = arith.minimumf %26, %29 : vector<4x16x1xf32>
    %37 = arith.minimumf %35, %36 : vector<4x16x1xf32>
    %cst_15 = arith.constant 1.000000e+00 : f32
    %38 = vector.broadcast %cst_15 : f32 to vector<4x16x1xf32>
    %39 = arith.minimumf %37, %38 : vector<4x16x1xf32>
    %40 = arith.subf %34, %39 : vector<4x16x1xf32>
    %cst_16 = arith.constant 1.000000e+00 : f32
    %41 = vector.broadcast %cst_16 : f32 to vector<4x16x1xf32>
    %42 = arith.divf %41, %40 : vector<4x16x1xf32>
    %43 = vector.broadcast %0 : vector<4x1x1xf32> to vector<4x16x1xf32>
    %44 = arith.cmpf olt, %3, %43 : vector<4x16x1xf32>
    %cst_17 = arith.constant 1.000000e+00 : f32
    %45 = vector.broadcast %cst_17 : f32 to vector<4x1x1xf32>
    %46 = arith.cmpf oeq, %0, %45 : vector<4x1x1xf32>
    %cst_18 = arith.constant dense<true> : vector<4x1x1xi1>
    %47 = arith.xori %46, %cst_18 : vector<4x1x1xi1>
    %48 = vector.broadcast %47 : vector<4x1x1xi1> to vector<4x16x1xi1>
    %49 = arith.andi %44, %48 : vector<4x16x1xi1>
    %cst_19 = arith.constant 0.000000e+00 : f32
    %50 = vector.broadcast %cst_19 : f32 to vector<4x16x1xf32>
    %51 = arith.select %49, %42, %50 : vector<4x16x1xi1>, vector<4x16x1xf32>
    %52 = vector.broadcast %46 : vector<4x1x1xi1> to vector<4x16x1xi1>
    %53 = arith.andi %44, %52 : vector<4x16x1xi1>
    %cst_20 = arith.constant 1.000000e+00 : f32
    %cst_21 = arith.constant 0.000000e+00 : f32
    %54 = vector.broadcast %cst_20 : f32 to vector<4x16x1xf32>
    %55 = vector.broadcast %cst_21 : f32 to vector<4x16x1xf32>
    %56 = arith.select %53, %54, %55 : vector<4x16x1xi1>, vector<4x16x1xf32>
    %57 = arith.mulf %39, %51 : vector<4x16x1xf32>
    %58 = arith.subf %56, %57 : vector<4x16x1xf32>
    %59 = arith.addf %51, %58 : vector<4x16x1xf32>
    %60 = vector.extract_strided_slice %1 {offsets = [0, 0, 0], sizes = [4, 1, 128], strides = [1, 1, 1]} : vector<4x5x128xf32> to vector<4x1x128xf32>
    %61 = vector.broadcast %59 : vector<4x16x1xf32> to vector<4x16x128xf32>
    %62 = vector.broadcast %60 : vector<4x1x128xf32> to vector<4x16x128xf32>
    %63 = arith.mulf %61, %62 : vector<4x16x128xf32>
    %64 = arith.mulf %21, %51 : vector<4x16x1xf32>
    %65 = arith.addf %64, %58 : vector<4x16x1xf32>
    %66 = vector.extract_strided_slice %1 {offsets = [0, 1, 0], sizes = [4, 1, 128], strides = [1, 1, 1]} : vector<4x5x128xf32> to vector<4x1x128xf32>
    %67 = vector.broadcast %65 : vector<4x16x1xf32> to vector<4x16x128xf32>
    %68 = vector.broadcast %66 : vector<4x1x128xf32> to vector<4x16x128xf32>
    %69 = arith.mulf %67, %68 : vector<4x16x128xf32>
    %70 = arith.addf %63, %69 : vector<4x16x128xf32>
    %71 = arith.mulf %23, %51 : vector<4x16x1xf32>
    %72 = arith.addf %71, %58 : vector<4x16x1xf32>
    %73 = vector.extract_strided_slice %1 {offsets = [0, 2, 0], sizes = [4, 1, 128], strides = [1, 1, 1]} : vector<4x5x128xf32> to vector<4x1x128xf32>
    %74 = vector.broadcast %72 : vector<4x16x1xf32> to vector<4x16x128xf32>
    %75 = vector.broadcast %73 : vector<4x1x128xf32> to vector<4x16x128xf32>
    %76 = arith.mulf %74, %75 : vector<4x16x128xf32>
    %77 = arith.addf %70, %76 : vector<4x16x128xf32>
    %78 = arith.mulf %26, %51 : vector<4x16x1xf32>
    %79 = arith.addf %78, %58 : vector<4x16x1xf32>
    %80 = vector.extract_strided_slice %1 {offsets = [0, 3, 0], sizes = [4, 1, 128], strides = [1, 1, 1]} : vector<4x5x128xf32> to vector<4x1x128xf32>
    %81 = vector.broadcast %79 : vector<4x16x1xf32> to vector<4x16x128xf32>
    %82 = vector.broadcast %80 : vector<4x1x128xf32> to vector<4x16x128xf32>
    %83 = arith.mulf %81, %82 : vector<4x16x128xf32>
    %84 = arith.addf %77, %83 : vector<4x16x128xf32>
    %85 = arith.mulf %29, %51 : vector<4x16x1xf32>
    %86 = arith.addf %85, %58 : vector<4x16x1xf32>
    %87 = vector.extract_strided_slice %1 {offsets = [0, 4, 0], sizes = [4, 1, 128], strides = [1, 1, 1]} : vector<4x5x128xf32> to vector<4x1x128xf32>
    %88 = vector.broadcast %86 : vector<4x16x1xf32> to vector<4x16x128xf32>
    %89 = vector.broadcast %87 : vector<4x1x128xf32> to vector<4x16x128xf32>
    %90 = arith.mulf %88, %89 : vector<4x16x128xf32>
    %91 = arith.addf %84, %90 : vector<4x16x128xf32>
    %c0_22 = arith.constant 0 : index
    %c0_23 = arith.constant 0 : index
    %c0_24 = arith.constant 0 : index
    %92 = vector.load %arg3[%c0_22, %c0_23, %c0_24] : memref<4x16x128xf32, #tpu.memory_space<vmem>>, vector<4x16x128xf32>
    tpu.vector_store %arg3[%c0_22, %c0_23, %c0_24], %91 {strides = array<i32>} : memref<4x16x128xf32, #tpu.memory_space<vmem>>, vector<4x16x128xf32>,
    return
  }
  func.func @transform_0(%arg0: i32) -> (i32, i32, i32) {
    %c0_i32 = arith.constant 0 : i32
    %c0_i32_0 = arith.constant 0 : i32
    %c0_i32_1 = arith.constant 0 : i32
    return %arg0, %c0_i32, %c0_i32_0 : i32, i32, i32
  }
  func.func @transform_1(%arg0: i32) -> (i32, i32, i32) {
    %c0_i32 = arith.constant 0 : i32
    %c0_i32_0 = arith.constant 0 : i32
    %c0_i32_1 = arith.constant 0 : i32
    return %arg0, %c0_i32, %c0_i32_0 : i32, i32, i32
  }
  func.func @transform_2(%arg0: i32) -> (i32, i32, i32) {
    %c0_i32 = arith.constant 0 : i32
    %c0_i32_0 = arith.constant 0 : i32
    %c0_i32_1 = arith.constant 0 : i32
    return %arg0, %c0_i32, %c0_i32_0 : i32, i32, i32
  }
}

</mosaic_0001>

<bundles_post_ra>
// kernel: gaussian_cross_attn.1
= control target key start
LH: loop header
LB: loop body
LE: loop exit
PB: predicated region body
PF: predicated region fallthrough
CT: control target
= control target key end

     0   :  { %v20_v1 = vlaneseq  ;;  %v915_v2 = vmov 0   ;;  %vm1584_vm1 = vmmov 1   ;;  %s1581_s0 = inlined_call_operand.vmem [shape: f32[4,1,1], index: 0, kind: input, shape index: {}]   ;;  %s1582_s1 = inlined_call_operand.vmem [shape: f32[4,5,128], index: 1, kind: input, shape index: {}]   ;;  %s1583_s2 = inlined_call_operand.hbm [shape: f32[4,16,128], index: 2, kind: output, shape index: {}]  }
   0x1   :  { %v13_v0 = vld [vmem:[%s1581_s0 + $0x1] sm:$0x1]  ;;  %852 = vset.pattern.permute.xlu1 %v915_v2  ;;  %851 = vset.pattern.permute.xlu0 %v915_v2  ;;  %v12_v4 = vld [vmem:[%s1581_s0] sm:$0x1]  ;;  %v14_v5 = vld [vmem:[%s1581_s0 + $0x2] sm:$0x1] }
   0x2   :  { %v842_v3 = vadd.f32 -1.0, %v13_v0  ;;  %vm290_vm0 = vcmp.eq.f32.partialorder %v13_v0, 1.0  ;;  %v947_v6 = vshrl.u32 %v20_v1, 7  ;;  %v841_v8 = vadd.f32 -1.0, %v12_v4 }
   0x3   :  { %vm294_vm2 = vmxor %vm290_vm0, %vm1584_vm1  ;;  %v338_v7 = vsel %vm290_vm0, 1, %v915_v2  ;;  %vm289_vm3 = vcmp.eq.f32.partialorder %v12_v4, 1.0  ;;  %v843_v12 = vadd.f32 -1.0, %v14_v5 }
   0x4   :  { %1604 = vst [vmem:[#allocation5_spill] sm:$0xff] %v947_v6  ;;  %v30_v9 = vmax.f32 %v842_v3, 1.0  ;;  %v298_v10 = vsel %vm294_vm2, 1, %v915_v2  ;;  %vm293_vm4 = vmxor %vm289_vm3, %vm1584_vm1  ;;  %v337_v11 = vsel %vm289_vm3, 1, %v915_v2  ;;  %v22_v13 = vadd.s32 8, %v947_v6 }
   0x5   :  { %v956_v14 = vcvt.s32.f32 %v947_v6  ;;  %v959_v15 = vsub.s32 0, %v947_v6  ;;  %v29_v16 = vmax.f32 %v841_v8, 1.0 }
   0x7   :  { %1605 = vst [vmem:[#allocation6_spill] sm:$0xff] %v959_v15 }
   0x8   :  { %7 = vsyncpa [#allocation3], 0  ;;  %853 = vrcp.f32 %v30_v9  ;;  %v297_v17 = vsel %vm293_vm4, 1, %v915_v2  ;;  %v31_v18 = vmax.f32 %v843_v12, 1.0  ;;  %vm291_vm5 = vcmp.eq.f32.partialorder %v14_v5, 1.0 }
   0x9   :  { %v962_v19 = vcvt.s32.f32 %v22_v13  ;;  %v268_v20 = vrot.slane %v13_v0, %v959_v15  ;;  %v308_v21 = vrot.slane %v298_v10, %v959_v15  ;;  %v348_v22 = vrot.slane %v338_v7, %v959_v15  ;;  %vm295_vm6 = vmxor %vm291_vm5, %vm1584_vm1  ;;  %v15_v27 = vld [vmem:[%s1581_s0 + $0x3] sm:$0x1] }
   0xa   :  { %855 = vrcp.f32 %v29_v16  ;;  %v264_v23 = vrot.slane %v12_v4, %v959_v15  ;;  %v304_v24 = vrot.slane %v297_v17, %v959_v15  ;;  %v344_v25 = vrot.slane %v337_v11, %v959_v15 }
   0xb   :  { %vm283_vm7 = vcmp.lt.f32.partialorder %v956_v14, %v268_v20  ;;  %vm284_vm8 = vcmp.lt.f32.partialorder %v962_v19, %v268_v20  ;;  %vm318_vm9 = vcmp.eq.s32.totalorder %v308_v21, 1  ;;  %vm974_vm10 = vcmp.eq.s32.totalorder %v348_v22, 1 }
   0xc   :  { %vm981_vm11 = vmand %vm283_vm7, %vm318_vm9  ;;  %vm281_vm12 = vcmp.lt.f32.partialorder %v956_v14, %v264_v23  ;;  %vm282_vm13 = vcmp.lt.f32.partialorder %v962_v19, %v264_v23  ;;  %vm987_vm14 = vcmp.eq.s32.totalorder %v304_v24, 1  ;;  %v1612_v30 = vmov 0 }
   0xd   :  { %vm993_vm15 = vmand %vm284_vm8, %vm318_vm9  ;;  %857 = vrcp.f32 %v31_v18  ;;  %v272_v31 = vrot.slane %v14_v5, %v959_v15  ;;  %v299_v32 = vsel %vm295_vm6, 1, %v915_v2  ;;  %v339_v33 = vsel %vm291_vm5, 1, %v915_v2 }
   0xe   :  { %v1613_v30 = vsel %vm993_vm15, 4294967295, %v1612_v30  ;;  %vm1003_vm0 = vmand %vm283_vm7, %vm974_vm10  ;;  %v312_v35 = vrot.slane %v299_v32, %v959_v15  ;;  %v352_v36 = vrot.slane %v339_v33, %v959_v15  ;;  %v844_v37 = vadd.f32 -1.0, %v15_v27 }
   0xf   :  { %v276_v38 = vrot.slane %v15_v27, %v959_v15  ;;  %vm1014_vm2 = vmand %vm284_vm8, %vm974_vm10  ;;  %vm1018_vm3 = vcmp.eq.s32.totalorder %v344_v25, 1  ;;  %v1620_v41 = vmov 0  ;;  %vm286_vm6 = vcmp.lt.f32.partialorder %v962_v19, %v272_v31 }
  0x10   :  { %vm1027_vm5 = vmand %vm281_vm12, %vm987_vm14  ;;  %v32_v42 = vmax.f32 %v844_v37, 1.0  ;;  %vm1585_vm7 = vcmp.eq.f32.partialorder %v15_v27, 1.0  ;;  %v1622_v43 = vmov 0  ;;  %vm319_vm9 = vcmp.eq.s32.totalorder %v312_v35, 1 }
  0x11   :  { %v1621_v41 = vsel %vm1027_vm5, 4294967295, %v1620_v41  ;;  %vm1036_vm8 = vmand %vm282_vm13, %vm987_vm14  ;;  %v340_v44 = vsel %vm1585_vm7, 1, %v915_v2  ;;  %vm359_vm14 = vcmp.eq.s32.totalorder %v352_v36, 1  ;;  %v1628_v48 = vmov 0 }
  0x12   :  { %v1623_v43 = vsel %vm1036_vm8, 4294967295, %v1622_v43  ;;  %vm1048_vm4 = vmand %vm281_vm12, %vm1018_vm3  ;;  %859 = vrcp.f32 %v32_v42  ;;  %v356_v46 = vrot.slane %v340_v44, %v959_v15  ;;  %vm1632_vm7 = vcmp.lt.f32.partialorder %v956_v14, %v272_v31 }
  0x13   :  { %vm1057_vm10 = vmand %vm282_vm13, %vm1018_vm3  ;;  %v1644_v0 = vmov 0  ;;  %v1648_v12 = vmov 0  ;;  %v1652_v18 = vmov 0 }
  0x14   :  { %vm1063_vm1 = vmand %vm286_vm6, %vm319_vm9  ;;  %vm360_vm3 = vcmp.eq.s32.totalorder %v356_v46, 1 }
  0x15   :  { %v1629_v48 = vsel %vm1063_vm1, 4294967295, %v1628_v48  ;;  %v854_v49 = vpop.eup %853  ;;  %vm1069_vm12 = vmand %vm286_vm6, %vm359_vm14  ;;  %vm1638_vm6 = vmmov 1   ;;  %vm1639_vm1 = vcmp.eq.f32.partialorder %v15_v27, 1.0 }
  0x16   :  { %v36_v51 = vmul.f32 4.0, %v854_v49  ;;  %vm1075_vm13 = vmand %vm1632_vm7, %vm319_vm9 }
  0x17   :  { %v856_v53 = vpop.eup %855  ;;  %vm1635_vm8 = vmmov %vm1632_vm7  ;;  %vm1640_vm7 = vcmp.lt.f32.partialorder %v962_v19, %v276_v38 }
  0x18   :  { %vm1081_vm15 = vmand %vm1635_vm8, %vm359_vm14  ;;  %v52_v55 = vrot.slane %v36_v51, %v959_v15  ;;  %v34_v56 = vmul.f32 4.0, %v856_v53  ;;  %vm1643_vm8 = vcmp.lt.f32.partialorder %v956_v14, %v276_v38 }
  0x19   :  { %vm296_vm5 = vmxor %vm1639_vm1, %vm1638_vm6 }
  0x1a   :  { %v300_v57 = vsel %vm296_vm5, 1, %v915_v2  ;;  %vm1091_vm9 = vmand %vm1640_vm7, %vm360_vm3  ;;  %v858_v59 = vpop.eup %857  ;;  %v67_v60 = vmul.f32 %v52_v55, %v956_v14  ;;  %v68_v61 = vmul.f32 %v52_v55, %v962_v19  ;;  %v48_v62 = vrot.slane %v34_v56, %v959_v15 }
  0x1b   :  { %v316_v63 = vrot.slane %v300_v57, %v959_v15  ;;  %vm1101_vm1 = vmand %vm1643_vm8, %vm360_vm3  ;;  %v38_v1 = vmul.f32 4.0, %v858_v59 }
  0x1c   :  { %v1645_v0 = vsel %vm1101_vm1, 4294967295, %v1644_v0  ;;  %v75_v2 = vmax.f32 %v67_v60, 0.0  ;;  %v76_v3 = vmax.f32 %v68_v61, 0.0  ;;  %v65_v4 = vmul.f32 %v48_v62, %v956_v14  ;;  %vm1647_vm14 = vmmov %vm1640_vm7 }
  0x1d   :  { %1646 = vst [vmem:[#allocation7_spill] sm:$0xff] %v1645_v0  ;;  %v66_v5 = vmul.f32 %v48_v62, %v962_v19  ;;  %v56_v7 = vrot.slane %v38_v1, %v959_v15  ;;  %vm320_vm5 = vcmp.eq.s32.totalorder %v316_v63, 1  ;;  %vm1651_vm6 = vmmov %vm1643_vm8  ;;  %v1586_v63 = vmov 0.0  }
  0x1e   :  { %v83_v8 = vmin.f32 %v75_v2, 4.0  ;;  %v84_v9 = vmin.f32 %v76_v3, 4.0  ;;  %v73_v10 = vmax.f32 %v65_v4, 0.0  ;;  %vm1110_vm3 = vmand %vm1647_vm14, %vm320_vm5  ;;  %v1133_v1 = vsel %vm1014_vm2, 1.0, %v1586_v63 }
  0x1f   :  { %v74_v11 = vmax.f32 %v66_v5, 0.0  ;;  %v1649_v12 = vsel %vm1110_vm3, 4294967295, %v1648_v12  ;;  %v860_v13 = vpop.eup %859  ;;  %v69_v16 = vmul.f32 %v56_v7, %v956_v14  ;;  %v70_v17 = vmul.f32 %v56_v7, %v962_v19  ;;  %vm1118_vm7 = vmand %vm1651_vm6, %vm320_vm5 }
  0x20   :  { %1650 = vst [vmem:[#allocation8_spill] sm:$0xff] %v1649_v12  ;;  %v1653_v18 = vsel %vm1118_vm7, 4294967295, %v1652_v18  ;;  %v91_v20 = vmul.f32 0.16, %v83_v8  ;;  %v92_v21 = vmul.f32 0.16, %v84_v9  ;;  %vm1666_vm2 = vnez %v1629_v48 }
  0x21   :  { %1654 = vst [vmem:[#allocation9_spill] sm:$0xff] %v1653_v18  ;;  %v81_v22 = vmin.f32 %v73_v10, 4.0  ;;  %v82_v23 = vmin.f32 %v74_v11, 4.0  ;;  %v77_v24 = vmax.f32 %v69_v16, 0.0  ;;  %v78_v25 = vmax.f32 %v70_v17, 0.0 }
  0x22   :  { %v40_v26 = vmul.f32 4.0, %v860_v13  ;;  %v101_v27 = vmul.f32 1.442695, %v91_v20  ;;  %v103_v29 = vmul.f32 1.442695, %v92_v21  ;;  %v1138_v2 = vsel %vm1048_vm4, 1.0, %v1586_v63 }
  0x23   :  { %v89_v31 = vmul.f32 0.16, %v81_v22  ;;  %v90_v32 = vmul.f32 0.16, %v82_v23  ;;  %v85_v36 = vmin.f32 %v77_v24, 4.0  ;;  %v86_v37 = vmin.f32 %v78_v25, 4.0 }
  0x24   :  { %v60_v33 = vrot.slane %v40_v26, %v959_v15  ;;  %861 = vpow2.f32 %v101_v27  ;;  %v1143_v3 = vsel %vm1057_vm10, 1.0, %v1586_v63  ;;  %v1150_v39 = vsel %vm1069_vm12, 1.0, %v1586_v63 }
  0x25   :  { %v97_v35 = vmul.f32 1.442695, %v89_v31  ;;  %863 = vpow2.f32 %v103_v29  ;;  %v99_v42 = vmul.f32 1.442695, %v90_v32  ;;  %v93_v44 = vmul.f32 0.16, %v85_v36 }
  0x26   :  { %v71_v38 = vmul.f32 %v60_v33, %v956_v14  ;;  %v72_v40 = vmul.f32 %v60_v33, %v962_v19  ;;  %v94_v51 = vmul.f32 0.16, %v86_v37  ;;  %v1128_v14 = vsel %vm1003_vm0, 1.0, %v1586_v63 }
  0x27   :  { %865 = vpow2.f32 %v97_v35  ;;  %v105_v56 = vmul.f32 1.442695, %v93_v44  ;;  %v1157_v47 = vsel %vm1081_vm15, 1.0, %v1586_v63  ;;  %vm1662_vm15 = vnez %v1613_v30 }
  0x28   :  { %v79_v46 = vmax.f32 %v71_v38, 0.0  ;;  %v80_v49 = vmax.f32 %v72_v40, 0.0  ;;  %867 = vpow2.f32 %v99_v42  ;;  %v107_v60 = vmul.f32 1.442695, %v94_v51 }
  0x29   :  { %869 = vpow2.f32 %v105_v56  ;;  %vm1664_vm0 = vnez %v1623_v43 }
  0x2a   :  { %v87_v53 = vmin.f32 %v79_v46, 4.0  ;;  %v88_v55 = vmin.f32 %v80_v49, 4.0  ;;  %871 = vpow2.f32 %v107_v60 }
  0x2c   :  { %v95_v57 = vmul.f32 0.16, %v87_v53  ;;  %v96_v59 = vmul.f32 0.16, %v88_v55 }
  0x2e   :  { %v109_v61 = vmul.f32 1.442695, %v95_v57  ;;  %v111_v62 = vmul.f32 1.442695, %v96_v59 }
  0x30   :  { %873 = vpow2.f32 %v109_v61 }
  0x31   :  { %v862_v19 = vpop.eup %861  ;;  %875 = vpow2.f32 %v111_v62 }
  0x32   :  { %v864_v34 = vpop.eup %863  ;;  %v115_v4 = vmul.f32 %v862_v19, %v862_v19  ;;  %v1145_v5 = vmul.f32 0.9231163, %v862_v19 }
  0x33   :  { %v116_v45 = vmul.f32 %v864_v34, %v864_v34  ;;  %v1152_v8 = vmul.f32 0.9231163, %v864_v34 }
  0x34   :  { %v866_v7 = vpop.eup %865  ;;  %v1159_v9 = vmul.f32 0.726149, %v115_v4  ;;  %v139_v10 = vmul.f32 %v862_v19, %v115_v4  ;;  %v155_v11 = vmul.f32 %v115_v4, %v115_v4 }
  0x35   :  { %v113_v13 = vmul.f32 %v866_v7, %v866_v7  ;;  %v1161_v16 = vmul.f32 0.9231163, %v866_v7  ;;  %v1163_v50 = vmul.f32 0.726149, %v116_v45  ;;  %v140_v17 = vmul.f32 %v864_v34, %v116_v45  ;;  %v868_v29 = vpop.eup %867 }
  0x36   :  { %v156_v20 = vmul.f32 %v116_v45, %v116_v45  ;;  %v1165_v21 = vmul.f32 0.48675224, %v139_v10  ;;  %v1167_v22 = vmul.f32 0.2780373, %v155_v11  ;;  %v171_v54 = vmax.f32 %v1145_v5, %v1159_v9  ;;  %v870_v62 = vpop.eup %869 }
  0x37   :  { %v203_v23 = vmin.f32 %v1145_v5, %v1159_v9  ;;  %v1173_v24 = vmul.f32 0.726149, %v113_v13  ;;  %v137_v25 = vmul.f32 %v866_v7, %v113_v13  ;;  %v153_v26 = vmul.f32 %v113_v13, %v113_v13  ;;  %v872_v45 = vpop.eup %871 }
  0x38   :  { %v1175_v27 = vmul.f32 0.48675224, %v140_v17  ;;  %v179_v31 = vmax.f32 %v1165_v21, %v1167_v22  ;;  %v211_v32 = vmin.f32 %v1165_v21, %v1167_v22  ;;  %v1181_v33 = vmul.f32 0.2780373, %v156_v20 }
  0x39   :  { %v172_v35 = vmax.f32 %v1152_v8, %v1163_v50  ;;  %v1185_v36 = vmul.f32 0.48675224, %v137_v25  ;;  %v1187_v37 = vmul.f32 0.2780373, %v153_v26  ;;  %v169_v38 = vmax.f32 %v1161_v16, %v1173_v24 }
  0x3a   :  { %v201_v40 = vmin.f32 %v1161_v16, %v1173_v24  ;;  %v187_v42 = vmax.f32 %v171_v54, %v179_v31  ;;  %v1193_v44 = vmin.f32 %v203_v23, %v211_v32  ;;  %v180_v46 = vmax.f32 %v1175_v27, %v1181_v33 }
  0x3b   :  { %v204_v49 = vmin.f32 %v1152_v8, %v1163_v50  ;;  %v177_v51 = vmax.f32 %v1185_v36, %v1187_v37  ;;  %v209_v53 = vmin.f32 %v1185_v36, %v1187_v37  ;;  %v212_v55 = vmin.f32 %v1175_v27, %v1181_v33 }
  0x3c   :  { %v114_v56 = vmul.f32 %v868_v29, %v868_v29  ;;  %v195_v57 = vmax.f32 %v187_v42, 1.0  ;;  %v1590_v59 = vmin.f32 %v1193_v44, 1.0  ;;  %v188_v60 = vmax.f32 %v172_v35, %v180_v46 }
  0x3d   :  { %v1206_v61 = vmul.f32 0.9231163, %v868_v29  ;;  %v185_v19 = vmax.f32 %v169_v38, %v177_v51  ;;  %v1208_v34 = vmin.f32 %v201_v40, %v209_v53  ;;  %v1210_v4 = vmin.f32 %v204_v49, %v212_v55  ;;  %v1216_v20 = vpop.eup %873 }
  0x3e   :  { %v1212_v7 = vmul.f32 0.726149, %v114_v56  ;;  %v235_v10 = vsub.f32 %v195_v57, %v1590_v59  ;;  %v196_v11 = vmax.f32 %v188_v60, 1.0  ;;  %v138_v13 = vmul.f32 %v868_v29, %v114_v56  ;;  %v876_v31 = vpop.eup %875 }
  0x3f   :  { %v154_v17 = vmul.f32 %v114_v56, %v114_v56  ;;  %v193_v54 = vmax.f32 %v185_v19, 1.0  ;;  %v1589_v23 = vmin.f32 %v1208_v34, 1.0  ;;  %v1588_v25 = vmin.f32 %v1210_v4, 1.0 }
  0x40   :  { %v170_v26 = vmax.f32 %v1206_v61, %v1212_v7  ;;  %877 = vrcp.f32 %v235_v10  ;;  %v1222_v32 = vmul.f32 0.48675224, %v138_v13  ;;  %v202_v29 = vmin.f32 %v1206_v61, %v1212_v7 }
  0x41   :  { %v1224_v35 = vmul.f32 0.2780373, %v154_v17  ;;  %v233_v38 = vsub.f32 %v193_v54, %v1589_v23  ;;  %v236_v40 = vsub.f32 %v196_v11, %v1588_v25  ;;  %v118_v42 = vmul.f32 %v872_v45, %v872_v45 }
  0x42   :  { %v1232_v46 = vmul.f32 0.9231163, %v872_v45  ;;  %v117_v53 = vmul.f32 %v870_v62, %v870_v62  ;;  %v1238_v55 = vmul.f32 0.9231163, %v870_v62  ;;  %v1271_v23 = vmul.f32 0.9231163, %v876_v31 }
  0x43   :  { %v178_v49 = vmax.f32 %v1222_v32, %v1224_v35  ;;  %v210_v51 = vmin.f32 %v1222_v32, %v1224_v35  ;;  %879 = vrcp.f32 %v233_v38  ;;  %v1240_v56 = vmul.f32 0.726149, %v118_v42 }
  0x44   :  { %v142_v57 = vmul.f32 %v872_v45, %v118_v42  ;;  %v158_v60 = vmul.f32 %v118_v42, %v118_v42  ;;  %881 = vrcp.f32 %v236_v40  ;;  %v1244_v11 = vmul.f32 0.726149, %v117_v53  ;;  %1655 = vst [vmem:[#allocation10_spill] sm:$0xff] %v1271_v23 }
  0x45   :  { %v186_v19 = vmax.f32 %v170_v26, %v178_v49  ;;  %v1242_v10 = vmin.f32 %v202_v29, %v210_v51  ;;  %v174_v54 = vmax.f32 %v1232_v46, %v1240_v56  ;;  %v206_v38 = vmin.f32 %v1232_v46, %v1240_v56 }
  0x46   :  { %v1246_v13 = vmul.f32 0.48675224, %v142_v57  ;;  %v1248_v17 = vmul.f32 0.2780373, %v158_v60  ;;  %v141_v42 = vmul.f32 %v870_v62, %v117_v53  ;;  %v157_v40 = vmul.f32 %v117_v53, %v117_v53 }
  0x47   :  { %v194_v63 = vmax.f32 %v186_v19, 1.0  ;;  %v1593_v45 = vmin.f32 %v1242_v10, 1.0  ;;  %v173_v49 = vmax.f32 %v1238_v55, %v1244_v11  ;;  %v205_v51 = vmin.f32 %v1238_v55, %v1244_v11 }
  0x48   :  { %v182_v26 = vmax.f32 %v1246_v13, %v1248_v17  ;;  %v214_v29 = vmin.f32 %v1246_v13, %v1248_v17  ;;  %v1265_v60 = vmul.f32 0.48675224, %v141_v42  ;;  %v1267_v19 = vmul.f32 0.2780373, %v157_v40 }
  0x49   :  { %v234_v57 = vsub.f32 %v194_v63, %v1593_v45  ;;  %v120_v62 = vmul.f32 %v876_v31, %v876_v31  ;;  %v119_v59 = vmul.f32 %v1216_v20, %v1216_v20 }
  0x4a   :  { %v190_v53 = vmax.f32 %v174_v54, %v182_v26  ;;  %v1269_v25 = vmin.f32 %v206_v38, %v214_v29  ;;  %v181_v15 = vmax.f32 %v1265_v60, %v1267_v19  ;;  %v213_v63 = vmin.f32 %v1265_v60, %v1267_v19 }
  0x4b   :  { %883 = vrcp.f32 %v234_v57  ;;  %v1279_v42 = vmul.f32 0.726149, %v120_v62  ;;  %v144_v54 = vmul.f32 %v876_v31, %v120_v62  ;;  %v160_v38 = vmul.f32 %v120_v62, %v120_v62 }
  0x4c   :  { %v198_v40 = vmax.f32 %v190_v53, 1.0  ;;  %v1599_v45 = vmin.f32 %v1269_v25, 1.0  ;;  %v189_v26 = vmax.f32 %v173_v49, %v181_v15  ;;  %v1282_v29 = vmin.f32 %v205_v51, %v213_v63 }
  0x4d   :  { %1656 = vst [vmem:[#allocation11_spill] sm:$0xff] %v1279_v42  ;;  %v176_v6 = vmax.f32 %v1271_v23, %v1279_v42  ;;  %v208_v57 = vmin.f32 %v1271_v23, %v1279_v42  ;;  %v878_v0 = vpop.eup %877  ;;  %v1290_v12 = vmul.f32 0.48675224, %v144_v54  ;;  %v1292_v53 = vmul.f32 0.2780373, %v160_v38 }
  0x4e   :  { %v238_v18 = vsub.f32 %v198_v40, %v1599_v45  ;;  %v1295_v31 = vmul.f32 0.9231163, %v1216_v20  ;;  %v1299_v15 = vsel %vm981_vm11, %v878_v0, 0.0  ;;  %v197_v49 = vmax.f32 %v189_v26, 1.0 }
  0x4f   :  { %1657 = vst [vmem:[#allocation12_spill] sm:$0xff] %v1290_v12  ;;  %1658 = vst [vmem:[#allocation13_spill] sm:$0xff] %v1292_v53  ;;  %v229_v51 = vmin.f32 %v1282_v29, 1.0  ;;  %v1302_v62 = vmul.f32 0.726149, %v119_v59  ;;  %v1659_v63 = vmin.f32 %v1193_v44, 1.0  ;;  %v184_v54 = vmax.f32 %v1290_v12, %v1292_v53 }
  0x50   :  { %885 = vrcp.f32 %v238_v18  ;;  %v216_v38 = vmin.f32 %v1290_v12, %v1292_v53  ;;  %v880_v45 = vpop.eup %879  ;;  %v143_v0 = vmul.f32 %v1216_v20, %v119_v59  ;;  %v159_v26 = vmul.f32 %v119_v59, %v119_v59 }
  0x51   :  { %v379_v40 = vmul.f32 %v1299_v15, %v1659_v63  ;;  %v237_v28 = vsub.f32 %v197_v49, %v229_v51  ;;  %v175_v42 = vmax.f32 %v1295_v31, %v1302_v62  ;;  %v882_v44 = vpop.eup %881  ;;  %vm1660_vm11 = vnez %v1621_v41 }
  0x52   :  { %v1321_v18 = vsel %vm1660_vm11, %v880_v45, 0.0  ;;  %v192_v23 = vmax.f32 %v176_v6, %v184_v54  ;;  %v1323_v53 = vmin.f32 %v208_v57, %v216_v38  ;;  %v1661_v12 = vmin.f32 %v1208_v34, 1.0 }
  0x53   :  { %v1317_v63 = vsub.f32 %v1128_v14, %v379_v40  ;;  %v1330_v59 = vsel %vm1662_vm15, %v882_v44, 0.0  ;;  %887 = vrcp.f32 %v237_v28  ;;  %v1332_v20 = vmul.f32 0.48675224, %v143_v0 }
  0x54   :  { %v377_v49 = vmul.f32 %v1321_v18, %v1661_v12  ;;  %v1663_v41 = vmin.f32 %v1210_v4, 1.0  ;;  %v200_v45 = vmax.f32 %v192_v23, 1.0  ;;  %v232_v57 = vmin.f32 %v1323_v53, 1.0  ;;  %v1671_v58 = vld [vmem:[#allocation11_spill] sm:$0xff] }
  0x55   :  { %v395_v14 = vadd.f32 %v1317_v63, %v1299_v15  ;;  %v1343_v12 = vmul.f32 0.2780373, %v159_v26  ;;  %v207_v30 = vmin.f32 %v1295_v31, %v1302_v62  ;;  %v465_v40 = vmul.f32 %v1321_v18, %v1161_v16 }
  0x56   :  { %v380_v6 = vmul.f32 %v1330_v59, %v1663_v41  ;;  %v1341_v34 = vsub.f32 %v1138_v2, %v377_v49  ;;  %v240_v4 = vsub.f32 %v200_v45, %v232_v57  ;;  %v468_v23 = vmul.f32 %v1330_v59, %v1152_v8 }
  0x57   :  { %413 = vperm.xlu1 %852, %v395_v14   ;;  %v467_v2 = vmul.f32 %v1299_v15, %v1145_v5  ;;  %v183_v28 = vmax.f32 %v1332_v20, %v1343_v12  ;;  %v215_v16 = vmin.f32 %v1332_v20, %v1343_v12  ;;  %v553_v41 = vmul.f32 %v1321_v18, %v1173_v24 }
  0x58   :  { %v1350_v54 = vsub.f32 %v1133_v1, %v380_v6  ;;  %v393_v38 = vadd.f32 %v1341_v34, %v1321_v18  ;;  %v1365_v1 = vadd.f32 %v465_v40, %v1341_v34  ;;  %v884_v0 = vpop.eup %883  ;;  %889 = vrcp.f32 %v240_v4 }
  0x59   :  { %v1373_v5 = vadd.f32 %v467_v2, %v1317_v63  ;;  %v330_v44 = vsel %vm1664_vm0, %v884_v0, 0.0  ;;  %v191_v49 = vmax.f32 %v175_v42, %v183_v28  ;;  %v1377_v14 = vmin.f32 %v207_v30, %v215_v16 }
  0x5a   :  { %v396_v26 = vadd.f32 %v1350_v54, %v1330_v59  ;;  %v1370_v8 = vadd.f32 %v468_v23, %v1350_v54  ;;  %403 = vperm.xlu0 %851, %v393_v38   ;;  %v1665_v6 = vmin.f32 %v1242_v10, 1.0  ;;  %v466_v40 = vmul.f32 %v330_v44, %v1206_v61 }
  0x5b   :  { %v554_v4 = vmul.f32 %v330_v44, %v1212_v7  ;;  %v556_v23 = vmul.f32 %v1330_v59, %v1163_v50  ;;  %v199_v2 = vmax.f32 %v191_v49, 1.0  ;;  %v231_v43 = vmin.f32 %v1377_v14, 1.0 }
  0x5c   :  { %418 = vperm.xlu1 %852, %v396_v26   ;;  %v378_v45 = vmul.f32 %v330_v44, %v1665_v6  ;;  %v1389_v42 = vadd.f32 %v553_v41, %v1341_v34  ;;  %v555_v24 = vmul.f32 %v1299_v15, %v1159_v9  ;;  %v642_v61 = vmul.f32 %v330_v44, %v1222_v32 }
  0x5d   :  { %v1395_v10 = vadd.f32 %v556_v23, %v1350_v54  ;;  %v641_v7 = vmul.f32 %v1321_v18, %v1185_v36  ;;  %v886_v50 = vpop.eup %885  ;;  %v239_v38 = vsub.f32 %v199_v2, %v231_v43  ;;  %v644_v9 = vmul.f32 %v1330_v59, %v1175_v27 }
  0x5e   :  { %v386_v30 = vsub.f32 %v1143_v3, %v378_v45  ;;  %v1403_v28 = vadd.f32 %v555_v24, %v1317_v63  ;;  %v643_v3 = vmul.f32 %v1299_v15, %v1165_v21  ;;  %v334_v32 = vsel %vm1666_vm2, %v886_v50, 0.0 }
  0x5f   :  { %v1667_v26 = vmin.f32 %v1269_v25, 1.0  ;;  %891 = vrcp.f32 %v239_v38  ;;  %v470_v41 = vmul.f32 %v334_v32, %v1232_v46  ;;  %v558_v6 = vmul.f32 %v334_v32, %v1240_v56 }
  0x60   :  { %v394_v16 = vadd.f32 %v386_v30, %v330_v44  ;;  %v1411_v0 = vadd.f32 %v466_v40, %v386_v30  ;;  %v1413_v36 = vadd.f32 %v554_v4, %v386_v30  ;;  %v888_v27 = vpop.eup %887  ;;  %v1419_v45 = vadd.f32 %v642_v61, %v386_v30 }
  0x61   :  { %v382_v49 = vmul.f32 %v334_v32, %v1667_v26  ;;  %v1422_v21 = vadd.f32 %v641_v7, %v1341_v34  ;;  %v1425_v48 = vadd.f32 %v644_v9, %v1350_v54  ;;  %v1428_v40 = vadd.f32 %v643_v3, %v1317_v63 }
  0x62   :  { %408 = vperm.xlu0 %851, %v394_v16   ;;  %v333_v46 = vsel %vm1075_vm13, %v888_v27, 0.0  ;;  %v646_v56 = vmul.f32 %v334_v32, %v1246_v13  ;;  %v730_v4 = vmul.f32 %v330_v44, %v1224_v35  ;;  %v729_v35 = vmul.f32 %v1321_v18, %v1187_v37 }
  0x63   :  { %v390_v25 = vsub.f32 %v1150_v39, %v382_v49  ;;  %v381_v23 = vmul.f32 %v333_v46, %v229_v51  ;;  %v469_v2 = vmul.f32 %v333_v46, %v1238_v55  ;;  %v557_v24 = vmul.f32 %v333_v46, %v1244_v11 }
  0x64   :  { %v645_v61 = vmul.f32 %v333_v46, %v1265_v60  ;;  %v1443_v9 = vadd.f32 %v730_v4, %v386_v30  ;;  %v732_v13 = vmul.f32 %v1330_v59, %v1181_v33  ;;  %v1668_v11 = vmov 0.0   ;;  %v1670_v59 = vld [vmem:[#allocation10_spill] sm:$0xff] }
  0x65   :  { %v398_v7 = vadd.f32 %v390_v25, %v334_v32  ;;  %v478_v50 = vadd.f32 %v470_v41, %v390_v25  ;;  %v566_v38 = vadd.f32 %v558_v6, %v390_v25  ;;  %v1440_v39 = vadd.f32 %v646_v56, %v390_v25  ;;  %v890_v55 = vpop.eup %889 }
  0x66   :  { %v389_v52 = vsub.f32 %v1157_v47, %v381_v23  ;;  %v376_v60 = vsel %vm1091_vm9, 1.0, %v1668_v11  ;;  %v731_v29 = vmul.f32 %v1299_v15, %v1167_v22  ;;  %v734_v51 = vmul.f32 %v334_v32, %v1248_v17  ;;  %v1672_v22 = vld [vmem:[#allocation12_spill] sm:$0xff] }
  0x67   :  { %428 = vperm.xlu1 %852, %v398_v7   ;;  %v733_v47 = vmul.f32 %v333_v46, %v1267_v19  ;;  %v336_v37 = vsel %vm1110_vm3, %v890_v55, 0.0  ;;  %v737_v17 = vadd.f32 %v729_v35, %v1341_v34  ;;  %v740_v19 = vadd.f32 %v732_v13, %v1350_v54 }
  0x68   :  { %v397_v44 = vadd.f32 %v389_v52, %v333_v46  ;;  %v477_v18 = vadd.f32 %v469_v2, %v389_v52  ;;  %v565_v3 = vadd.f32 %v557_v24, %v389_v52  ;;  %v384_v33 = vmul.f32 %v336_v37, %v232_v57  ;;  %v1673_v46 = vld [vmem:[#allocation13_spill] sm:$0xff] }
  0x69   :  { %v472_v16 = vmul.f32 %v336_v37, %v1670_v59  ;;  %v560_v26 = vmul.f32 %v336_v37, %v1671_v58  ;;  %v653_v49 = vadd.f32 %v645_v61, %v389_v52  ;;  %v648_v15 = vmul.f32 %v336_v37, %v1672_v22  ;;  %v16_v59 = vld [vmem:[%s1582_s1] sm:$0x1f] }
  0x6a   :  { %423 = vperm.xlu0 %851, %v397_v44   ;;  %v739_v32 = vadd.f32 %v731_v29, %v1317_v63  ;;  %v392_v41 = vsub.f32 %v376_v60, %v384_v33  ;;  %v742_v6 = vadd.f32 %v734_v51, %v390_v25  ;;  %v741_v27 = vadd.f32 %v733_v47, %v389_v52 }
  0x6b   :  { %v736_v53 = vmul.f32 %v336_v37, %v1673_v46  ;;  %v375_v54 = vsel %vm1101_vm1, 1.0, %v1668_v11 }
  0x6c   :  { %v400_v57 = vadd.f32 %v392_v41, %v336_v37  ;;  %v480_v56 = vadd.f32 %v472_v16, %v392_v41  ;;  %v568_v4 = vadd.f32 %v560_v26, %v392_v41  ;;  %v656_v23 = vadd.f32 %v648_v15, %v392_v41  ;;  %v892_v2 = vpop.eup %891  ;;  %v1677_v37 = vld [vmem:[#allocation5_spill] sm:$0xff]  ;;  %v17_v15 = vld [vmem:[%s1582_s1 + $0x8] sm:$0x1f] }
  0x6d   :  { %v744_v24 = vadd.f32 %v736_v53, %v392_v41  ;;  %v335_v7 = vsel %vm1118_vm7, %v892_v2, 0.0  ;;  %v699_v26 = vsub.s32 3, %v1677_v37  ;;  %v18_v41 = vld [vmem:[%s1582_s1 + $0x10] sm:$0x1f] }
  0x6e   :  { %438 = vperm.xlu1 %852, %v400_v57   ;;  %v383_v63 = vmul.f32 %v335_v7, %v231_v43  ;;  %v471_v25 = vmul.f32 %v335_v7, %v1295_v31  ;;  %v559_v52 = vmul.f32 %v335_v7, %v1302_v62  ;;  %v647_v35 = vmul.f32 %v335_v7, %v1332_v20 }
  0x6f   :  { %v735_v13 = vmul.f32 %v335_v7, %v1343_v12  ;;  %v700_v53 = vrot.slane %v16_v59, %v699_v26  ;;  %v787_v57 = vsub.s32 4, %v1677_v37 }
  0x70   :  { %v391_v55 = vsub.f32 %v375_v54, %v383_v63  ;;  %v704_v54 = vrot.slane %v17_v15, %v699_v26 }
  0x72   :  { %488 = vperm.xlu1 %852, %v1411_v0   ;;  %v399_v60 = vadd.f32 %v391_v55, %v335_v7  ;;  %v479_v29 = vadd.f32 %v471_v25, %v391_v55  ;;  %v567_v51 = vadd.f32 %v559_v52, %v391_v55  ;;  %v655_v47 = vadd.f32 %v647_v35, %v391_v55 }
  0x73   :  { %v743_v44 = vadd.f32 %v735_v13, %v391_v55  ;;  %v788_v13 = vrot.slane %v16_v59, %v787_v57 }
  0x74   :  { %433 = vperm.xlu0 %851, %v399_v60  }
  0x76   :  { %498 = vperm.xlu1 %852, %v1370_v8  }
  0x78   :  { %483 = vperm.xlu0 %851, %v1365_v1  }
  0x7a   :  { %508 = vperm.xlu1 %852, %v478_v50  }
  0x7c   :  { %493 = vperm.xlu0 %851, %v1373_v5  }
  0x7e   :  { %518 = vperm.xlu1 %852, %v480_v56  }
  0x80   :  { %503 = vperm.xlu0 %851, %v477_v18   ;;  %v523_v18 = vsub.s32 1, %v1677_v37 }
  0x82   :  { %576 = vperm.xlu1 %852, %v1413_v36   ;;  %v524_v58 = vrot.slane %v16_v59, %v523_v18  ;;  %v528_v46 = vrot.slane %v17_v15, %v523_v18  ;;  %v532_v34 = vrot.slane %v18_v41, %v523_v18 }
  0x84   :  { %513 = vperm.xlu0 %851, %v479_v29  }
  0x86   :  { %586 = vperm.xlu1 %852, %v1395_v10  }
  0x88   :  { %571 = vperm.xlu0 %851, %v1389_v42  }
  0x8a   :  { %596 = vperm.xlu1 %852, %v566_v38  }
  0x8c   :  { %581 = vperm.xlu0 %851, %v1403_v28  }
  0x8e   :  { %606 = vperm.xlu1 %852, %v568_v4  }
  0x90   :  { %591 = vperm.xlu0 %851, %v565_v3   ;;  %v611_v3 = vsub.s32 2, %v1677_v37 }
  0x92   :  { %664 = vperm.xlu1 %852, %v1419_v45   ;;  %v616_v2 = vrot.slane %v17_v15, %v611_v3  ;;  %v620_v60 = vrot.slane %v18_v41, %v611_v3 }
  0x94   :  { %601 = vperm.xlu0 %851, %v567_v51   ;;  %v708_v51 = vrot.slane %v18_v41, %v699_v26 }
  0x96   :  { %674 = vperm.xlu1 %852, %v1425_v48  }
  0x98   :  { %659 = vperm.xlu0 %851, %v1422_v21  }
  0x9a   :  { %684 = vperm.xlu1 %852, %v1440_v39  }
  0x9c   :  { %669 = vperm.xlu0 %851, %v1428_v40  }
  0x9e   :  { %694 = vperm.xlu1 %852, %v656_v23  }
  0xa0   :  { %679 = vperm.xlu0 %851, %v653_v49   ;;  %v612_v49 = vrot.slane %v16_v59, %v611_v3 }
  0xa2   :  { %752 = vperm.xlu1 %852, %v1443_v9  }
  0xa4   :  { %689 = vperm.xlu0 %851, %v655_v47  }
  0xa6   :  { %762 = vperm.xlu1 %852, %v740_v19  }
  0xa8   :  { %747 = vperm.xlu0 %851, %v737_v17   ;;  %v1679_v17 = vld [vmem:[#allocation6_spill] sm:$0xff] }
  0xa9   :  { %v444_v19 = vrot.slane %v16_v59, %v1679_v17  ;;  %v448_v56 = vrot.slane %v17_v15, %v1679_v17  ;;  %v452_v61 = vrot.slane %v18_v41, %v1679_v17 }
  0xaa   :  { %772 = vperm.xlu1 %852, %v742_v6   ;;  %v19_v6 = vld [vmem:[%s1582_s1 + $0x18] sm:$0x1f]  ;;  %s918_s1 = smov [#allocation2]  }
  0xab   :  { %v1540_v7 = vrot.slane %v19_v6, %v1679_v17  ;;  %v1542_v55 = vrot.slane %v19_v6, %v523_v18  ;;  %v1544_v29 = vrot.slane %v19_v6, %v611_v3  ;;  %s830_s24 = sshll.u32 %s918_s1, 4  ;;  %s831_s24 = int_to_ptr.vmem [resolvable:$true] %s830_s24 }
  0xac   :  { %757 = vperm.xlu0 %851, %v739_v32   ;;  %s893_s25 = scalar_lea.vmem %s831_s24, 1024  ;;  %p898_p1 = scmp.lt.s32.totalorder %s831_s24, %s831_s24 }
  0xad   :  { %p894_p0 = scmp.ne.s32.totalorder %s831_s24, %s893_s25  ;;  %p899_p2 = scmp.lt.s32.totalorder %s893_s25, %s893_s25 }
  0xae   :  { %782 = vperm.xlu1 %852, %v744_v24  }
  0xaf   :  { %p900_p3 = por %p899_p2, %p898_p1 }
  0xb0   :  { %767 = vperm.xlu0 %851, %v741_v27  }
  0xb1   :  { %p901_p4 = pnand %p900_p3, %p894_p0 }
  0xb4   :  { %777 = vperm.xlu0 %851, %v743_v44  }
  0xd2   :  { %v1492_v31 = vpop.permute.xlu1 %413 }
  0xd5   :  { %v1494_v20 = vpop.permute.xlu0 %403 }
  0xd6   :  { %v457_v3 = vmul.f32 %v444_v19, %v1494_v20 }
  0xd7   :  { %v419_v62 = vpop.permute.xlu1 %418 }
  0xd8   :  { %v460_v47 = vmul.f32 %v448_v56, %v419_v62 }
  0xdd   :  { %v409_v1 = vpop.permute.xlu0 %408 }
  0xde   :  { %v458_v4 = vmul.f32 %v444_v19, %v409_v1 }
  0xe2   :  { %v1496_v12 = vpop.permute.xlu1 %428 }
  0xe5   :  { %v1500_v5 = vpop.permute.xlu0 %423 }
  0xe9   :  { %v1498_v8 = vpop.permute.xlu1 %438 }
  0xed   :  { %v489_v14 = vpop.permute.xlu1 %488 }
  0xee   :  { %v538_v27 = vmul.f32 %v524_v58, %v489_v14 }
  0xef   :  { %v1502_v43 = vpop.permute.xlu0 %433 }
  0xf0   :  { %1676 = vst [vmem:[#allocation8_spill] sm:$0xff] %v1502_v43  ;;  %v546_v25 = vadd.f32 %v538_v27, %v458_v4  ;;  %v792_v43 = vrot.slane %v17_v15, %v787_v57  ;;  %v1548_v27 = vrot.slane %v18_v41, %v787_v57  ;;  %v462_v4 = vmul.f32 %v452_v61, %v1496_v12 }
  0xf1   :  { %v499_v42 = vpop.permute.xlu1 %498 }
  0xf2   :  { %v540_v52 = vmul.f32 %v528_v46, %v499_v42 }
  0xf3   :  { %v484_v10 = vpop.permute.xlu0 %483 }
  0xf4   :  { %v537_v37 = vmul.f32 %v524_v58, %v484_v10  ;;  %v548_v42 = vadd.f32 %v540_v52, %v460_v47 }
  0xf5   :  { %v509_v28 = vpop.permute.xlu1 %508 }
  0xf6   :  { %v542_v17 = vmul.f32 %v532_v34, %v509_v28  ;;  %v545_v15 = vadd.f32 %v537_v37, %v457_v3 }
  0xf7   :  { %v1504_v0 = vpop.permute.xlu0 %493 }
  0xf8   :  { %v539_v41 = vmul.f32 %v528_v46, %v1504_v0 }
  0xf9   :  { %v1506_v36 = vpop.permute.xlu1 %518 }
  0xfa   :  { %v544_v20 = vmul.f32 %v1542_v55, %v1506_v36 }
  0xfb   :  { %v1508_v45 = vpop.permute.xlu0 %503 }
  0xfc   :  { %v541_v0 = vmul.f32 %v532_v34, %v1508_v45 }
  0xfd   :  { %v577_v21 = vpop.permute.xlu1 %576 }
  0xfe   :  { %v626_v23 = vmul.f32 %v612_v49, %v577_v21  ;;  %v1546_v21 = vrot.slane %v19_v6, %v699_v26 }
  0xff   :  { %v1510_v48 = vpop.permute.xlu0 %513 }
 0x100   :  { %v634_v44 = vadd.f32 %v626_v23, %v546_v25  ;;  %v1552_v23 = vrot.slane %v19_v6, %v787_v57  ;;  %v550_v25 = vadd.f32 %v542_v17, %v462_v4 }
 0x101   :  { %v587_v40 = vpop.permute.xlu1 %586 }
 0x102   :  { %v628_v1 = vmul.f32 %v616_v2, %v587_v40  ;;  %v459_v40 = vmul.f32 %v448_v56, %v1492_v31  ;;  %v464_v31 = vmul.f32 %v1540_v7, %v1498_v8 }
 0x103   :  { %v572_v50 = vpop.permute.xlu0 %571 }
 0x104   :  { %v625_v62 = vmul.f32 %v612_v49, %v572_v50  ;;  %v636_v26 = vadd.f32 %v628_v1, %v548_v42  ;;  %v461_v49 = vmul.f32 %v452_v61, %v1500_v5  ;;  %v552_v5 = vadd.f32 %v544_v20, %v464_v31 }
 0x105   :  { %v597_v38 = vpop.permute.xlu1 %596 }
 0x106   :  { %v630_v10 = vmul.f32 %v620_v60, %v597_v38  ;;  %v633_v38 = vadd.f32 %v625_v62, %v545_v15  ;;  %v549_v47 = vadd.f32 %v541_v0, %v461_v49 }
 0x107   :  { %v1512_v39 = vpop.permute.xlu0 %581 }
 0x108   :  { %v627_v19 = vmul.f32 %v616_v2, %v1512_v39  ;;  %v638_v6 = vadd.f32 %v630_v10, %v550_v25 }
 0x109   :  { %v1514_v9 = vpop.permute.xlu1 %606 }
 0x10b   :  { %v1516_v11 = vpop.permute.xlu0 %591 }
 0x10c   :  { %v629_v45 = vmul.f32 %v620_v60, %v1516_v11 }
 0x10d   :  { %v665_v30 = vpop.permute.xlu1 %664 }
 0x10e   :  { %v714_v35 = vmul.f32 %v700_v53, %v665_v30  ;;  %v637_v60 = vadd.f32 %v629_v45, %v549_v47 }
 0x10f   :  { %v1520_v33 = vpop.permute.xlu0 %601 }
 0x110   :  { %1678 = vst [vmem:[#allocation10_spill] sm:$0xff] %v1520_v33  ;;  %v722_v30 = vadd.f32 %v714_v35, %v634_v44 }
 0x111   :  { %v675_v16 = vpop.permute.xlu1 %674 }
 0x112   :  { %v716_v18 = vmul.f32 %v704_v54, %v675_v16 }
 0x113   :  { %v660_v22 = vpop.permute.xlu0 %659 }
 0x114   :  { %v713_v52 = vmul.f32 %v700_v53, %v660_v22  ;;  %v632_v22 = vmul.f32 %v1544_v29, %v1514_v9  ;;  %v547_v53 = vadd.f32 %v539_v41, %v459_v40 }
 0x115   :  { %v685_v32 = vpop.permute.xlu1 %684 }
 0x116   :  { %v718_v12 = vmul.f32 %v708_v51, %v685_v32  ;;  %v721_v32 = vadd.f32 %v713_v52, %v633_v38  ;;  %v635_v2 = vadd.f32 %v627_v19, %v547_v53  ;;  %v640_v9 = vadd.f32 %v632_v22, %v552_v5 }
 0x117   :  { %v670_v24 = vpop.permute.xlu0 %669 }
 0x118   :  { %v715_v57 = vmul.f32 %v704_v54, %v670_v24  ;;  %v726_v61 = vadd.f32 %v718_v12, %v638_v6  ;;  %v543_v24 = vmul.f32 %v1542_v55, %v1510_v48 }
 0x119   :  { %v695_v63 = vpop.permute.xlu1 %694 }
 0x11a   :  { %v720_v8 = vmul.f32 %v1546_v21, %v695_v63  ;;  %v723_v54 = vadd.f32 %v715_v57, %v635_v2 }
 0x11b   :  { %v680_v14 = vpop.permute.xlu0 %679 }
 0x11c   :  { %v728_v63 = vadd.f32 %v720_v8, %v640_v9 }
 0x11d   :  { %v753_v33 = vpop.permute.xlu1 %752 }
 0x11e   :  { %v802_v59 = vmul.f32 %v788_v13, %v753_v33  ;;  %v724_v33 = vadd.f32 %v716_v18, %v636_v26  ;;  %v1681_v18 = vld [vmem:[#allocation10_spill] sm:$0xff] }
 0x11f   :  { %v690_v28 = vpop.permute.xlu0 %689 }
 0x120   :  { %v810_v58 = vadd.f32 %v802_v59, %v722_v30  ;;  %v1680_v30 = vld [vmem:[#allocation8_spill] sm:$0xff]  ;;  %v631_v59 = vmul.f32 %v1544_v29, %v1681_v18 }
 0x121   :  { %v763_v16 = vpop.permute.xlu1 %762  ;;  %v463_v11 = vmul.f32 %v1540_v7, %v1680_v30 }
 0x122   :  { %818 = vst [vmem:[#allocation2 + $0x8] sm:$0xff] %v810_v58  ;;  %v804_v50 = vmul.f32 %v792_v43, %v763_v16 }
 0x123   :  { %v748_v46 = vpop.permute.xlu0 %747  ;;  %v551_v48 = vadd.f32 %v543_v24, %v463_v11 }
 0x124   :  { %v812_v36 = vadd.f32 %v804_v50, %v724_v33  ;;  %v801_v56 = vmul.f32 %v788_v13, %v748_v46  ;;  %v717_v13 = vmul.f32 %v708_v51, %v680_v14  ;;  %v719_v51 = vmul.f32 %v1546_v21, %v690_v28 }
 0x125   :  { %v773_v35 = vpop.permute.xlu1 %772  ;;  %v639_v14 = vadd.f32 %v631_v59, %v551_v48 }
 0x126   :  { %820 = vst [vmem:[#allocation2 + $0x18] sm:$0xff] %v812_v36  ;;  %v806_v39 = vmul.f32 %v1548_v27, %v773_v35  ;;  %v809_v34 = vadd.f32 %v801_v56, %v721_v32  ;;  %v725_v55 = vadd.f32 %v717_v13, %v637_v60 }
 0x127   :  { %v758_v44 = vpop.permute.xlu0 %757  ;;  %v727_v26 = vadd.f32 %v719_v51, %v639_v14 }
 0x128   :  { %v814_v1 = vadd.f32 %v806_v39, %v726_v61  ;;  %817 = vst [vmem:[#allocation2] sm:$0xff] %v809_v34  ;;  %v803_v37 = vmul.f32 %v792_v43, %v758_v44 }
 0x129   :  { %v783_v17 = vpop.permute.xlu1 %782 }
 0x12a   :  { %822 = vst [vmem:[#allocation2 + $0x28] sm:$0xff] %v814_v1  ;;  %v808_v42 = vmul.f32 %v1552_v23, %v783_v17  ;;  %v811_v3 = vadd.f32 %v803_v37, %v723_v54 }
 0x12b   :  { %v768_v4 = vpop.permute.xlu0 %767 }
 0x12c   :  { %v816_v62 = vadd.f32 %v808_v42, %v728_v63  ;;  %819 = vst [vmem:[#allocation2 + $0x10] sm:$0xff] %v811_v3  ;;  %v805_v43 = vmul.f32 %v1548_v27, %v768_v4 }
 0x12e   :  { %824 = vst [vmem:[#allocation2 + $0x38] sm:$0xff] %v816_v62  ;;  %v813_v40 = vadd.f32 %v805_v43, %v725_v55 }
 0x12f   :  { %v778_v7 = vpop.permute.xlu0 %777 }
 0x130   :  { %821 = vst [vmem:[#allocation2 + $0x20] sm:$0xff] %v813_v40  ;;  %v807_v29 = vmul.f32 %v1552_v23, %v778_v7 }
 0x132   :  { %v815_v10 = vadd.f32 %v807_v29, %v727_v26 }
 0x134   :  { %823 = vst [vmem:[#allocation2 + $0x30] sm:$0xff] %v815_v10 }
 0x135   :  { %904 = shalt.err (!%p901_p4)
}
 0x136   :  { %s919_s26 = smov 128   ;;  %s920_s27 = smov 8  }
 0x137   :  { %836 = dma.vmem_to_hbm [thread:$0]  %s831_s24, 1024, %s1583_s2, [#allocation3], %s919_s26, %s919_s26, %s920_s27  }
 0x138   :  { %913 = dma.done.wait [#allocation3], 1024  }
 0x139   :  { %914 = vsyncadd [#allocation3], 4294966272 }
 0x13a   :  { %840 = vsyncpa [#allocation3], 1 }

</bundles_post_ra>
